<compile_context>
chip_gen: v6e
topology: v6e:2x2x1
jax: 0.10.0
libtpu: 0.0.40
codegen_flags: <defaults>
</compile_context>

<pallas_src>
import functools

import jax
import jax.numpy as jnp
from jax.experimental import pallas as pl
from jax.experimental.pallas import tpu as pltpu

IN_F = 20
HID_F = 100
OUT_F = 1


def _round_up(x, m):
    return ((x + m - 1) // m) * m


def mlp_kernel(x_ref, w1_ref, b1_ref, w2_ref, b2_ref, o_ref):
    # fc1 on the MXU: (HID_F, IN_F) @ (IN_F, TB) -> (HID_F, TB), f32 accumulate.
    h = jnp.dot(w1_ref[...], x_ref[...], preferred_element_type=jnp.float32)
    h = h + b1_ref[...]            # (HID_F, 1) broadcast across lanes (VPU)
    h = jnp.maximum(h, 0.0)        # ReLU (VPU)
    # fc2 (out_features == 1): VPU multiply + sublane reduction off the MXU.
    y = jnp.sum(h * w2_ref[...], axis=0, keepdims=True)   # (1, TB)
    o_ref[...] = (y + b2_ref[0, 0]).astype(o_ref.dtype)   # scalar bias from SMEM


@functools.partial(jax.jit, static_argnames=("tb",))
def net_forward(x, w1, b1, w2, b2, *, tb=1024):
    """Forward pass of Net.

    x : (B, IN_F)  float32
    w1: (HID_F, IN_F), b1: (HID_F,)      -- PyTorch nn.Linear layouts
    w2: (OUT_F, HID_F), b2: (OUT_F,)
    returns (B, OUT_F) float32
    """
    B = x.shape[0]
    # Batch rides the lane axis: the tile must be a multiple of 128 lanes.
    tb = min(tb, _round_up(B, 128))
    bp = _round_up(B, tb)

    # Feature-major input, zero-padded batch tail (padded rows are discarded).
    xt = jnp.pad(x.T, ((0, 0), (0, bp - B)))          # (IN_F, Bp)

    b1c = b1.reshape(HID_F, 1)                        # per-feature bias column
    w2c = w2.reshape(HID_F, 1)                        # fc2 weight as a column
    b2s = b2.reshape(1, 1)                            # scalar -> SMEM

    yt = pl.pallas_call(
        mlp_kernel,
        out_shape=jax.ShapeDtypeStruct((OUT_F, bp), jnp.float32),
        grid_spec=pltpu.PrefetchScalarGridSpec(
            num_scalar_prefetch=0,
            grid=(bp // tb,),
            in_specs=[
                pl.BlockSpec((IN_F, tb), lambda i: (0, i)),        # x tile (streamed)
                pl.BlockSpec((HID_F, IN_F), lambda i: (0, 0)),     # w1 (resident)
                pl.BlockSpec((HID_F, 1), lambda i: (0, 0)),        # b1 (resident)
                pl.BlockSpec((HID_F, 1), lambda i: (0, 0)),        # w2 column (resident)
                pl.BlockSpec(memory_space=pltpu.MemorySpace.SMEM), # b2 scalar
            ],
            out_specs=pl.BlockSpec((OUT_F, tb), lambda i: (0, i)),
        ),
        compiler_params=pltpu.CompilerParams(
            dimension_semantics=("parallel",),   # shard batch tiles across TCs (v7x)
        ),
    )(xt, w1, b1c, w2c, b2s)

    # Lane-dense (1, Bp) slab back to the PyTorch (B, 1) layout.
    return yt[:, :B].T


def init_params(key):
    """Deterministic init mimicking nn.Linear's uniform(-1/sqrt(fan_in), ...)."""
    k1, k2, k3, k4 = jax.random.split(key, 4)
    bound1 = 1.0 / jnp.sqrt(IN_F)
    bound2 = 1.0 / jnp.sqrt(HID_F)
    # PyTorch layouts: weight (out_features, in_features), bias (out_features,)
    w1 = jax.random.uniform(k1, (HID_F, IN_F), jnp.float32, -bound1, bound1)
    b1 = jax.random.uniform(k2, (HID_F,), jnp.float32, -bound1, bound1)
    w2 = jax.random.uniform(k3, (OUT_F, HID_F), jnp.float32, -bound2, bound2)
    b2 = jax.random.uniform(k4, (OUT_F,), jnp.float32, -bound2, bound2)
    return w1, b1, w2, b2


if __name__ == "__main__":
    key = jax.random.PRNGKey(0)
    k_x, k_p = jax.random.split(key)

    batch = 8
    x = jax.random.normal(k_x, (batch, IN_F), dtype=jnp.float32)
    w1, b1, w2, b2 = init_params(k_p)

    out = net_forward(x, w1, b1, w2, b2)
    jax.block_until_ready(out)

    # Pure-JAX reference check (PyTorch semantics: y = relu(x W1^T + b1) W2^T + b2)
    ref = jnp.maximum(x @ w1.T + b1, 0.0) @ w2.T + b2
    assert out.shape == (batch, OUT_F)
    assert jnp.allclose(out, ref, atol=1e-4, rtol=1e-4), float(jnp.max(jnp.abs(out - ref)))

    print("KERNEL_OK")
</pallas_src>

<mosaic_0001>
module attributes {stable_mosaic.version = 11 : i64} {
  func.func @mlp_kernel(%arg0: i32, %arg1: memref<20x128xf32, #tpu.memory_space<vmem>>, %arg2: memref<100x20xf32, #tpu.memory_space<vmem>>, %arg3: memref<100x1xf32, #tpu.memory_space<vmem>>, %arg4: memref<100x1xf32, #tpu.memory_space<vmem>>, %arg5: memref<1x1xf32, #tpu.memory_space<smem>>, %arg6: memref<1x128xf32, #tpu.memory_space<vmem>>) attributes {dimension_semantics = [#tpu.dimension_semantics<parallel>], iteration_bounds = array<i64: 1>, scalar_prefetch = 0 : i64, scratch_operands = 0 : i64, tpu.core_type = #tpu.core_type<tc>, window_params = [{transform_indices = @transform_0, window_bounds = array<i64: 20, 128>}, {pipeline_mode = #tpu.pipeline_mode<synchronous>, transform_indices = @transform_1, window_bounds = array<i64: 100, 20>}, {pipeline_mode = #tpu.pipeline_mode<synchronous>, transform_indices = @transform_2, window_bounds = array<i64: 100, 1>}, {pipeline_mode = #tpu.pipeline_mode<synchronous>, transform_indices = @transform_3, window_bounds = array<i64: 100, 1>}, {transform_indices = @transform_4, window_bounds = array<i64: 1, 1>}, {transform_indices = @transform_5, window_bounds = array<i64: 1, 128>}]} {
    %c0 = arith.constant 0 : index
    %c0_0 = arith.constant 0 : index
    %0 = vector.load %arg2[%c0, %c0_0] : memref<100x20xf32, #tpu.memory_space<vmem>>, vector<100x20xf32>
    %c0_1 = arith.constant 0 : index
    %c0_2 = arith.constant 0 : index
    %1 = vector.load %arg1[%c0_1, %c0_2] : memref<20x128xf32, #tpu.memory_space<vmem>>, vector<20x128xf32>
    %cst = arith.constant dense<0.000000e+00> : vector<100x128xf32>
    %2 = tpu.matmul %0, %1, %cst {dimension_numbers = #tpu.dot_dimension_numbers<[1], [0], [0], [1], [0, 0, 1, 1], [], []>} : vector<100x20xf32>, vector<20x128xf32>, vector<100x128xf32> -> vector<100x128xf32>
    %c0_3 = arith.constant 0 : index
    %c0_4 = arith.constant 0 : index
    %3 = vector.load %arg3[%c0_3, %c0_4] : memref<100x1xf32, #tpu.memory_space<vmem>>, vector<100x1xf32>
    %4 = vector.broadcast %3 : vector<100x1xf32> to vector<100x128xf32>
    %5 = arith.addf %2, %4 : vector<100x128xf32>
    %cst_5 = arith.constant 0.000000e+00 : f32
    %6 = vector.broadcast %cst_5 : f32 to vector<100x128xf32>
    %7 = arith.maximumf %5, %6 : vector<100x128xf32>
    %c0_6 = arith.constant 0 : index
    %c0_7 = arith.constant 0 : index
    %8 = vector.load %arg4[%c0_6, %c0_7] : memref<100x1xf32, #tpu.memory_space<vmem>>, vector<100x1xf32>
    %9 = vector.broadcast %8 : vector<100x1xf32> to vector<100x128xf32>
    %10 = arith.mulf %7, %9 : vector<100x128xf32>
    %cst_8 = arith.constant dense<0.000000e+00> : vector<128xf32>
    %11 = vector.multi_reduction <add>, %10, %cst_8 [0] : vector<100x128xf32> to vector<128xf32>
    %12 = vector.shape_cast %11 : vector<128xf32> to vector<1x128xf32>
    %c0_9 = arith.constant 0 : index
    %c0_10 = arith.constant 0 : index
    %13 = memref.load %arg5[%c0_9, %c0_10] : memref<1x1xf32, #tpu.memory_space<smem>>
    %14 = vector.broadcast %13 : f32 to vector<1x128xf32>
    %15 = arith.addf %12, %14 : vector<1x128xf32>
    %c0_11 = arith.constant 0 : index
    %c0_12 = arith.constant 0 : index
    %16 = vector.load %arg6[%c0_11, %c0_12] : memref<1x128xf32, #tpu.memory_space<vmem>>, vector<1x128xf32>
    tpu.vector_store %arg6[%c0_11, %c0_12], %15 {strides = array<i32>} : memref<1x128xf32, #tpu.memory_space<vmem>>, vector<1x128xf32>,
    return
  }
  func.func @transform_0(%arg0: i32) -> (i32, i32) {
    %c0_i32 = arith.constant 0 : i32
    %c0_i32_0 = arith.constant 0 : i32
    return %c0_i32, %arg0 : i32, i32
  }
  func.func @transform_1(%arg0: i32) -> (i32, i32) {
    %c0_i32 = arith.constant 0 : i32
    %c0_i32_0 = arith.constant 0 : i32
    %c0_i32_1 = arith.constant 0 : i32
    return %c0_i32, %c0_i32_0 : i32, i32
  }
  func.func @transform_2(%arg0: i32) -> (i32, i32) {
    %c0_i32 = arith.constant 0 : i32
    %c0_i32_0 = arith.constant 0 : i32
    %c0_i32_1 = arith.constant 0 : i32
    return %c0_i32, %c0_i32_0 : i32, i32
  }
  func.func @transform_3(%arg0: i32) -> (i32, i32) {
    %c0_i32 = arith.constant 0 : i32
    %c0_i32_0 = arith.constant 0 : i32
    %c0_i32_1 = arith.constant 0 : i32
    return %c0_i32, %c0_i32_0 : i32, i32
  }
  func.func @transform_4(%arg0: i32) -> (i32, i32) {
    %c0_i32 = arith.constant 0 : i32
    %c0_i32_0 = arith.constant 0 : i32
    %c0_i32_1 = arith.constant 0 : i32
    return %c0_i32, %c0_i32_0 : i32, i32
  }
  func.func @transform_5(%arg0: i32) -> (i32, i32) {
    %c0_i32 = arith.constant 0 : i32
    %c0_i32_0 = arith.constant 0 : i32
    return %c0_i32, %arg0 : i32, i32
  }
}

</mosaic_0001>

<bundles_post_ra>
// kernel: net_forward.1
= control target key start
LH: loop header
LB: loop body
LE: loop exit
PB: predicated region body
PF: predicated region fallthrough
CT: control target
= control target key end

     0   :  { %vm155_vm0 = vcmask 1043456   ;;  %v506_v0 = vmov 0.0   ;;  %vm115_vm1 = vcmask 162816   ;;  %vm507_vm2 = vmmov 0   ;;  %s719_s0 = inlined_call_operand.vmem [shape: f32[20,128], index: 0, kind: input, shape index: {}]   ;;  %s720_s1 = inlined_call_operand.vmem [shape: f32[100,20], index: 1, kind: input, shape index: {}]   ;;  %s721_s2 = inlined_call_operand.vmem [shape: f32[100,1], index: 2, kind: input, shape index: {}]   ;;  %s722_s3 = inlined_call_operand.vmem [shape: f32[100,1], index: 3, kind: input, shape index: {}]   ;;  %s723_s4 = inlined_call_operand.<no memory space> [shape: f32[1,1], index: 4, kind: input, shape index: {}]   ;;  %s724_s5 = inlined_call_operand.vmem [shape: f32[1,128], index: 5, kind: output, shape index: {}]  }
   0x1   :  { %450 = vmatprep.subr.mxu0 %v506_v0  ;;  %495 = vmatprep.subr.mxu1 %v506_v0  ;;  %v36_v1 = vld [vmem:[%s719_s0 + $0x10] sm:$0xf]  ;;  %v35_v2 = vld [vmem:[%s719_s0 + $0x8] sm:$0xff]  ;;  %v34_v3 = vld [vmem:[%s719_s0] sm:$0xff]  ;;  %v508_v10 = vmov 0  }
   0x2   :  { %451 = vmatpush3.msk.msra.mxu0 %vm155_vm0, %v36_v1  ;;  %498 = vmatpush3.msk.msra.mxu1 %vm155_vm0, %v36_v1  ;;  %v21_v4 = vld [vmem:[%s720_s1] sm:$0xff]  ;;  %v28_v5 = vld [vmem:[%s720_s1 + $0x38] sm:$0xff]  ;;  %v39_v7 = vld [vmem:[%s721_s2 + $0x10] sm:$0xff] }
   0x3   :  { %452 = vmatprep.subr.mxu0 %v506_v0  ;;  %496 = vmatprep.subr.mxu1 %v506_v0  ;;  %v37_v6 = vld [vmem:[%s721_s2] sm:$0xff]  ;;  %v22_v8 = vld [vmem:[%s720_s1 + $0x8] sm:$0xff]  ;;  %v40_v12 = vld [vmem:[%s721_s2 + $0x18] sm:$0xff] }
   0x4   :  { %453 = vmatpush3.msra.mxu0 %v35_v2  ;;  %499 = vmatpush3.msra.mxu1 %v35_v2  ;;  %v29_v9 = vld [vmem:[%s720_s1 + $0x40] sm:$0xff]  ;;  %v38_v11 = vld [vmem:[%s721_s2 + $0x8] sm:$0xff]  ;;  %v23_v13 = vld [vmem:[%s720_s1 + $0x10] sm:$0xff] }
   0x5   :  { %454 = vmatprep.subr.mxu0 %v506_v0  ;;  %497 = vmatprep.subr.mxu1 %v506_v0  ;;  %v30_v14 = vld [vmem:[%s720_s1 + $0x48] sm:$0xff]  ;;  %v302_v15 = vld [vmem:[%s722_s3] sm:$0xff]  ;;  %v24_v17 = vld [vmem:[%s720_s1 + $0x18] sm:$0xff] }
   0x6   :  { %455 = vmatpush3.msra.mxu0 %v34_v3  ;;  %500 = vmatpush3.msra.mxu1 %v34_v3  ;;  %v303_v16 = vld [vmem:[%s722_s3 + $0x8] sm:$0xff]  ;;  %v31_v18 = vld [vmem:[%s720_s1 + $0x50] sm:$0xff]  ;;  %v41_v19 = vld [vmem:[%s721_s2 + $0x20] sm:$0xff] }
   0x7   :  { %456 = vmatprep.mubr.msk.f32.mxu0 %vm507_vm2, %v506_v0  ;;  %477 = vmatprep.mubr.msk.f32.mxu1 %vm507_vm2, %v506_v0  ;;  %v304_v20 = vld [vmem:[%s722_s3 + $0x10] sm:$0xff]  ;;  %v25_v21 = vld [vmem:[%s720_s1 + $0x20] sm:$0xff]  ;;  %v32_v22 = vld [vmem:[%s720_s1 + $0x58] sm:$0xff] }
   0x8   :  { %457 = vmatmul.mubr.msk.f32.vlgmr.msra.gmra.mxu0 %vm115_vm1, %v21_v4  ;;  %478 = vmatmul.mubr.msk.f32.vlgmr.msra.gmra.mxu1 %vm115_vm1, %v28_v5  ;;  %v42_v23 = vld [vmem:[%s721_s2 + $0x28] sm:$0xff]  ;;  %v305_v24 = vld [vmem:[%s722_s3 + $0x18] sm:$0xff]  ;;  %v33_v26 = vld [vmem:[%s720_s1 + $0x60] sm:$0xf] }
   0x9   :  { %459 = vmatprep.mubr.msk.f32.mxu0 %vm507_vm2, %v506_v0  ;;  %480 = vmatprep.mubr.msk.f32.mxu1 %vm507_vm2, %v506_v0  ;;  %v26_v25 = vld [vmem:[%s720_s1 + $0x28] sm:$0xff]  ;;  %v43_v27 = vld [vmem:[%s721_s2 + $0x30] sm:$0xff]  ;;  %v306_v28 = vld [vmem:[%s722_s3 + $0x20] sm:$0xff] }
   0xa   :  { %504 = vset.pattern.permute.xlu0 %v508_v10  ;;  %505 = vset.pattern.permute.xlu1 %v508_v10  ;;  %v27_v29 = vld [vmem:[%s720_s1 + $0x30] sm:$0xff]  ;;  %v44_v30 = vld [vmem:[%s721_s2 + $0x38] sm:$0xff]  ;;  %v307_v31 = vld [vmem:[%s722_s3 + $0x28] sm:$0xff] }
   0xb   :  { %52 = vperm.xlu0 %504, %v37_v6   ;;  %62 = vperm.xlu1 %505, %v39_v7   ;;  %v45_v32 = vld [vmem:[%s721_s2 + $0x40] sm:$0xff]  ;;  %v308_v33 = vld [vmem:[%s722_s3 + $0x30] sm:$0xff]  ;;  %v46_v34 = vld [vmem:[%s721_s2 + $0x48] sm:$0xff] }
   0xc   :  { %460 = vmatmul.mubr.msk.f32.gmra.mxu0 %vm115_vm1, %v22_v8  ;;  %481 = vmatmul.mubr.msk.f32.gmra.mxu1 %vm115_vm1, %v29_v9  ;;  %v309_v35 = vld [vmem:[%s722_s3 + $0x38] sm:$0xff]  ;;  %v47_v36 = vld [vmem:[%s721_s2 + $0x50] sm:$0xff]  ;;  %v310_v37 = vld [vmem:[%s722_s3 + $0x40] sm:$0xff] }
   0xd   :  { %462 = vmatprep.mubr.msk.f32.mxu0 %vm507_vm2, %v506_v0  ;;  %483 = vmatprep.mubr.msk.f32.mxu1 %vm507_vm2, %v506_v0  ;;  %v48_v38 = vld [vmem:[%s721_s2 + $0x58] sm:$0xff]  ;;  %v311_v39 = vld [vmem:[%s722_s3 + $0x48] sm:$0xff]  ;;  %v49_v40 = vld [vmem:[%s721_s2 + $0x60] sm:$0xf] }
   0xe   :  { %v312_v41 = vld [vmem:[%s722_s3 + $0x50] sm:$0xff]  ;;  %v313_v42 = vld [vmem:[%s722_s3 + $0x58] sm:$0xff]  ;;  %v314_v43 = vld [vmem:[%s722_s3 + $0x60] sm:$0xf] }
   0xf   :  { %57 = vperm.xlu0 %504, %v38_v11   ;;  %67 = vperm.xlu1 %505, %v40_v12  }
  0x10   :  { %463 = vmatmul.mubr.msk.f32.gmra.mxu0 %vm115_vm1, %v23_v13  ;;  %484 = vmatmul.mubr.msk.f32.gmra.mxu1 %vm115_vm1, %v30_v14 }
  0x11   :  { %465 = vmatprep.mubr.msk.f32.mxu0 %vm507_vm2, %v506_v0  ;;  %486 = vmatprep.mubr.msk.f32.mxu1 %vm507_vm2, %v506_v0 }
  0x13   :  { %317 = vperm.xlu0 %504, %v302_v15   ;;  %322 = vperm.xlu1 %505, %v303_v16  }
  0x14   :  { %466 = vmatmul.mubr.msk.f32.gmra.mxu0 %vm115_vm1, %v24_v17  ;;  %487 = vmatmul.mubr.msk.f32.gmra.mxu1 %vm115_vm1, %v31_v18 }
  0x15   :  { %468 = vmatprep.mubr.msk.f32.mxu0 %vm507_vm2, %v506_v0  ;;  %489 = vmatprep.mubr.msk.f32.mxu1 %vm507_vm2, %v506_v0 }
  0x17   :  { %72 = vperm.xlu0 %504, %v41_v19   ;;  %327 = vperm.xlu1 %505, %v304_v20  }
  0x18   :  { %469 = vmatmul.mubr.msk.f32.gmra.mxu0 %vm115_vm1, %v25_v21  ;;  %490 = vmatmul.mubr.msk.f32.gmra.mxu1 %vm115_vm1, %v32_v22 }
  0x19   :  { %471 = vmatprep.mubr.msk.f32.mxu0 %vm507_vm2, %v506_v0  ;;  %492 = vmatprep.mubr.msk.f32.mxu1 %vm507_vm2, %v506_v0 }
  0x1b   :  { %77 = vperm.xlu0 %504, %v42_v23   ;;  %332 = vperm.xlu1 %505, %v305_v24  }
  0x1c   :  { %472 = vmatmul.mubr.msk.f32.gmra.mxu0 %vm115_vm1, %v26_v25  ;;  %493 = vmatmul.mubr.msk.f32.gmra.mxu1 %vm115_vm1, %v33_v26 }
  0x1d   :  { %474 = vmatprep.mubr.msk.f32.mxu0 %vm507_vm2, %v506_v0 }
  0x1f   :  { %82 = vperm.xlu0 %504, %v43_v27   ;;  %337 = vperm.xlu1 %505, %v306_v28  }
  0x20   :  { %475 = vmatmul.mubr.msk.f32.gmra.mxu0 %vm115_vm1, %v27_v29 }
  0x23   :  { %87 = vperm.xlu0 %504, %v44_v30   ;;  %342 = vperm.xlu1 %505, %v307_v31  }
  0x27   :  { %92 = vperm.xlu0 %504, %v45_v32   ;;  %347 = vperm.xlu1 %505, %v308_v33  }
  0x2b   :  { %97 = vperm.xlu0 %504, %v46_v34   ;;  %352 = vperm.xlu1 %505, %v309_v35  }
  0x2f   :  { %102 = vperm.xlu0 %504, %v47_v36   ;;  %357 = vperm.xlu1 %505, %v310_v37  }
  0x33   :  { %107 = vperm.xlu0 %504, %v48_v38   ;;  %362 = vperm.xlu1 %505, %v311_v39  }
  0x37   :  { %112 = vperm.xlu0 %504, %v49_v40   ;;  %367 = vperm.xlu1 %505, %v312_v41  }
  0x3b   :  { %372 = vperm.xlu0 %504, %v313_v42   ;;  %377 = vperm.xlu1 %505, %v314_v43  }
  0x86   :  { %v53_v44 = vpop.permute.xlu0 %52  ;;  %v63_v45 = vpop.permute.xlu1 %62 }
  0x8a   :  { %v58_v46 = vpop.permute.xlu0 %57  ;;  %v68_v47 = vpop.permute.xlu1 %67 }
  0x8e   :  { %v318_v48 = vpop.permute.xlu0 %317  ;;  %v323_v49 = vpop.permute.xlu1 %322 }
  0x92   :  { %v73_v50 = vpop.permute.xlu0 %72  ;;  %v328_v51 = vpop.permute.xlu1 %327 }
  0x96   :  { %v78_v52 = vpop.permute.xlu0 %77  ;;  %v333_v53 = vpop.permute.xlu1 %332 }
  0x9a   :  { %v83_v54 = vpop.permute.xlu0 %82  ;;  %v338_v55 = vpop.permute.xlu1 %337 }
  0x9e   :  { %v88_v56 = vpop.permute.xlu0 %87  ;;  %v343_v59 = vpop.permute.xlu1 %342 }
  0xa2   :  { %v93_v0 = vpop.permute.xlu0 %92  ;;  %v348_v3 = vpop.permute.xlu1 %347 }
  0xa6   :  { %v98_v9 = vpop.permute.xlu0 %97  ;;  %v353_v14 = vpop.permute.xlu1 %352 }
  0xaa   :  { %v103_v23 = vpop.permute.xlu0 %102  ;;  %v358_v29 = vpop.permute.xlu1 %357 }
  0xae   :  { %v108_v40 = vpop.permute.xlu0 %107 }
  0xc8   :  { %v225_v57 = vpop.f32.mrf.mxu0  ;;  %v260_v58 = vpop.f32.mrf.mxu1 }
  0xc9   :  { %v226_v10 = vadd.f32 %v225_v57, %v53_v44  ;;  %v261_v41 = vadd.f32 %v260_v58, %v88_v56 }
  0xca   :  { %v458_v60 = vpop.f32.mrf.mxu0  ;;  %v479_v61 = vpop.f32.mrf.mxu1 }
  0xcb   :  { %v289_v19 = vmax.f32 %v226_v10, 0.0  ;;  %v296_v57 = vmax.f32 %v261_v41, 0.0 }
  0xcc   :  { %v230_v62 = vpop.f32.mrf.mxu0  ;;  %v265_v63 = vpop.f32.mrf.mxu1 }
  0xcd   :  { %v231_v6 = vadd.f32 %v230_v62, %v58_v46  ;;  %v380_v30 = vmul.f32 %v318_v48, %v289_v19  ;;  %v363_v46 = vpop.permute.xlu1 %362 }
  0xce   :  { %v461_v1 = vpop.f32.mrf.mxu0  ;;  %v482_v2 = vpop.f32.mrf.mxu1 }
  0xcf   :  { %v290_v15 = vmax.f32 %v231_v6, 0.0 }
  0xd0   :  { %v235_v4 = vpop.f32.mrf.mxu0  ;;  %v270_v5 = vpop.f32.mrf.mxu1 }
  0xd1   :  { %v236_v11 = vadd.f32 %v235_v4, %v63_v45  ;;  %v381_v24 = vmul.f32 %v323_v49, %v290_v15  ;;  %v271_v60 = vadd.f32 %v270_v5, %v98_v9  ;;  %v368_v58 = vpop.permute.xlu1 %367 }
  0xd2   :  { %v464_v7 = vpop.f32.mrf.mxu0  ;;  %v485_v8 = vpop.f32.mrf.mxu1 }
  0xd3   :  { %v291_v20 = vmax.f32 %v236_v11, 0.0  ;;  %v393_v35 = vadd.f32 %v381_v24, %v380_v30  ;;  %v298_v6 = vmax.f32 %v271_v60, 0.0 }
  0xd4   :  { %v240_v12 = vpop.f32.mrf.mxu0  ;;  %v275_v13 = vpop.f32.mrf.mxu1 }
  0xd5   :  { %v241_v16 = vadd.f32 %v240_v12, %v68_v47  ;;  %v382_v31 = vmul.f32 %v328_v51, %v291_v20  ;;  %v266_v47 = vadd.f32 %v265_v63, %v93_v0  ;;  %v276_v1 = vadd.f32 %v275_v13, %v103_v23  ;;  %v378_v9 = vpop.permute.xlu1 %377 }
  0xd6   :  { %v467_v17 = vpop.f32.mrf.mxu0  ;;  %v488_v18 = vpop.f32.mrf.mxu1  ;;  %v389_v10 = vmul.f32 %v363_v46, %v298_v6 }
  0xd7   :  { %v292_v25 = vmax.f32 %v241_v16, 0.0  ;;  %v394_v42 = vadd.f32 %v393_v35, %v382_v31  ;;  %v299_v0 = vmax.f32 %v276_v1, 0.0 }
  0xd8   :  { %v245_v21 = vpop.f32.mrf.mxu0  ;;  %v280_v22 = vpop.f32.mrf.mxu1 }
  0xd9   :  { %v246_v26 = vadd.f32 %v245_v21, %v73_v50  ;;  %v383_v36 = vmul.f32 %v333_v53, %v292_v25  ;;  %v113_v53 = vpop.permute.xlu0 %112  ;;  %v281_v7 = vadd.f32 %v280_v22, %v108_v40  ;;  %v390_v12 = vmul.f32 %v368_v58, %v299_v0 }
  0xda   :  { %v470_v27 = vpop.f32.mrf.mxu0  ;;  %v491_v28 = vpop.f32.mrf.mxu1  ;;  %v413_v25 = vstv %s723_s4 }
  0xdb   :  { %v293_v32 = vmax.f32 %v246_v26, 0.0  ;;  %v395_v49 = vadd.f32 %v394_v42, %v383_v36  ;;  %v300_v11 = vmax.f32 %v281_v7, 0.0 }
  0xdc   :  { %v250_v33 = vpop.f32.mrf.mxu0  ;;  %v285_v34 = vpop.f32.mrf.mxu1 }
  0xdd   :  { %v251_v37 = vadd.f32 %v250_v33, %v78_v52  ;;  %v384_v43 = vmul.f32 %v338_v55, %v293_v32  ;;  %v297_v52 = vmax.f32 %v266_v47, 0.0  ;;  %v286_v56 = vadd.f32 %v285_v34, %v113_v53  ;;  %v373_v16 = vpop.permute.xlu0 %372 }
  0xde   :  { %v473_v38 = vpop.f32.mrf.mxu0  ;;  %v494_v39 = vpop.f32.mrf.mxu1  ;;  %v387_v55 = vmul.f32 %v353_v14, %v296_v57  ;;  %v391_v17 = vmul.f32 %v373_v16, %v300_v11 }
  0xdf   :  { %v294_v44 = vmax.f32 %v251_v37, 0.0  ;;  %v396_v61 = vadd.f32 %v395_v49, %v384_v43  ;;  %v388_v63 = vmul.f32 %v358_v29, %v297_v52 }
  0xe0   :  { %v255_v45 = vpop.f32.mrf.mxu0 }
  0xe1   :  { %v385_v50 = vmul.f32 %v343_v59, %v294_v44  ;;  %v256_v48 = vadd.f32 %v255_v45, %v83_v54  ;;  %v301_v54 = vmax.f32 %v286_v56, 0.0 }
  0xe2   :  { %v476_v51 = vpop.f32.mrf.mxu0 }
  0xe3   :  { %v295_v62 = vmax.f32 %v256_v48, 0.0  ;;  %v397_v2 = vadd.f32 %v396_v61, %v385_v50  ;;  %v392_v13 = vmul.f32 %v378_v9, %v301_v54 }
  0xe5   :  { %v386_v4 = vmul.f32 %v348_v3, %v295_v62  ;;  %v404_v14 = vsel %vm155_vm0, %v392_v13, 0.0 }
  0xe7   :  { %v398_v8 = vadd.f32 %v397_v2, %v386_v4 }
  0xe9   :  { %v399_v59 = vadd.f32 %v398_v8, %v387_v55 }
  0xeb   :  { %v400_v5 = vadd.f32 %v399_v59, %v388_v63 }
  0xed   :  { %v401_v15 = vadd.f32 %v400_v5, %v389_v10 }
  0xef   :  { %v402_v3 = vadd.f32 %v401_v15, %v390_v12 }
  0xf1   :  { %v403_v18 = vadd.f32 %v402_v3, %v391_v17 }
  0xf3   :  { %v405_v19 = vadd.f32 %v404_v14, %v403_v18 }
  0xf5   :  { %v406_v20 = vrot.slane %v405_v19, 4 }
  0xf7   :  { %v407_v21 = vadd.f32 %v406_v20, %v405_v19 }
  0xf9   :  { %v408_v22 = vrot.slane %v407_v21, 2 }
  0xfb   :  { %v409_v23 = vadd.f32 %v408_v22, %v407_v21 }
  0xfd   :  { %v410_v24 = vrot.slane %v409_v23, 1 }
  0xff   :  { %v411_v26 = vadd.f32 %v410_v24, %v409_v23 }
 0x101   :  { %v414_v27 = vadd.f32 %v413_v25, %v411_v26 }
 0x103   :  { %415 = vst [vmem:[%s724_s5] sm:$0x1] %v414_v27 }

</bundles_post_ra>
